<compile_context>
chip_gen: v6e
topology: v6e:2x2x1
jax: 0.10.0
libtpu: 0.0.40
codegen_flags: <defaults>
</compile_context>

<pallas_src>
import jax
import jax.numpy as jnp
from jax.experimental import pallas as pl
from jax.experimental.pallas import tpu as pltpu


def attn_kernel(hidden_ref, enc_ref, wh_ref, we_ref, b_ref, v_ref, out_ref):
    # hidden_ref: (B, Hd)      decoder hidden state
    # enc_ref:    (B*L, De)    encoder outputs, b-major rows (row r = b*L + l)
    # wh_ref:     (Hd, Hd)     W[:, :Hd]   (contracted on its column axis)
    # we_ref:     (Hd, De)     W[:, Hd:]   (contracted on its column axis)
    # b_ref:      (1, Hd)      linear bias
    # v_ref:      (1, Hd)      scoring vector
    # out_ref:    (B, L)       softmax attention weights
    B, L = out_ref.shape

    # Hidden projection with the bias folded in: (B, Hd). Contract hidden's
    # feature dim with Wh's column dim (A @ Wh.T form) -- no weight transpose.
    hb = jax.lax.dot_general(
        hidden_ref[...], wh_ref[...],
        dimension_numbers=(((1,), (1,)), ((), ())),
        preferred_element_type=jnp.float32) + b_ref[...]

    # Encoder projection: one 2-D MXU matmul over all B*L positions,
    # contracting the feature axis directly (no in-kernel reshape of the
    # encoder operand, no transposed weight copy).
    eproj = jax.lax.dot_general(
        enc_ref[...], we_ref[...],
        dimension_numbers=(((1,), (1,)), ((), ())),
        preferred_element_type=jnp.float32)                      # (B*L, Hd)

    # (B*L, Hd) -> (B, L, Hd) is a pure leading-dim split (relayout-free for
    # L % 8 == 0); then add the per-batch hidden projection by broadcast.
    energy = jnp.tanh(eproj.reshape(B, L, -1) + hb[:, None, :])  # (B, L, Hd)

    # v-score: VPU multiply + lane reduce (no (., 1) MXU matmul, no reshape).
    scores = jnp.sum(energy * v_ref[...][None, :, :], axis=-1)   # (B, L)

    # Softmax over L (lane axis); approximate reciprocal runs on the EUP.
    m = jnp.max(scores, axis=1, keepdims=True)
    e = jnp.exp(scores - m)
    denom = jnp.sum(e, axis=1, keepdims=True)
    attn = e * pl.reciprocal(denom, approx=True)                 # (B, L)

    out_ref[...] = attn.astype(out_ref.dtype)


def prepare_attn_params(W, b, v, hidden_size):
    """One-time parameter prep (outside the per-call hot path).

    W (Hd, 2*Hd + onehot), b (Hd,), v (Hd,)  ->  Wh, We, b_row, v_row.
    No transposes: the kernel contracts on W's column axis directly.
    """
    Wh = W[:, :hidden_size]            # (Hd, Hd)
    We = W[:, hidden_size:]            # (Hd, De)
    b_row = b.reshape(1, hidden_size)  # (1, Hd)
    v_row = v.reshape(1, hidden_size)  # (1, Hd)
    return Wh, We, b_row, v_row


def _attn_forward_impl(hidden, encoder_outputs, Wh, We, b_row, v_row):
    """hidden (B, Hd), encoder_outputs (L, B, De); returns (B, 1, L)."""
    B, Hd = hidden.shape
    L, _, De = encoder_outputs.shape

    # Single fused layout-normalizing copy: (L, B, De) -> (B*L, De), b-major.
    enc_bl = jnp.transpose(encoder_outputs, (1, 0, 2)).reshape(B * L, De)

    out2d = pl.pallas_call(
        attn_kernel,
        out_shape=jax.ShapeDtypeStruct((B, L), jnp.float32),
        in_specs=[pl.BlockSpec(memory_space=pltpu.MemorySpace.VMEM)] * 6,
        out_specs=pl.BlockSpec(memory_space=pltpu.MemorySpace.VMEM),
    )(hidden, enc_bl, Wh, We, b_row, v_row)

    return out2d[:, None, :]           # free unsqueeze to (B, 1, L)


attn_forward = jax.jit(_attn_forward_impl)


def attn_reference(hidden, encoder_outputs, W, b, v):
    """Pure-JAX reference matching the PyTorch forward."""
    L = encoder_outputs.shape[0]
    H = jnp.broadcast_to(hidden[None], (L,) + hidden.shape).transpose(1, 0, 2)
    enc = jnp.transpose(encoder_outputs, (1, 0, 2))
    cat = jnp.concatenate([H, enc], axis=2)                      # (B, L, 2Hd+onehot)
    energy = jnp.tanh(cat @ W.T + b)                             # (B, L, Hd)
    scores = energy @ v                                          # (B, L)
    return jax.nn.softmax(scores, axis=1)[:, None, :]


if __name__ == "__main__":
    # Small shapes consistent with the module's forward:
    #   hidden_size=32, onehot_size=8, B=2, L=H*W=16
    hidden_size = 32
    onehot_size = 8
    B = 2
    L = 16
    De = hidden_size + onehot_size      # encoder feature dim so the Linear matches

    key = jax.random.PRNGKey(0)
    k_h, k_e, k_w, k_b, k_v = jax.random.split(key, 5)

    hidden = jax.random.normal(k_h, (B, hidden_size), dtype=jnp.float32)
    encoder_outputs = jax.random.normal(k_e, (L, B, De), dtype=jnp.float32)

    # Synthetic parameters (shapes from nn.Linear(2*Hd + onehot, Hd), v ~ N(0, 1/sqrt(Hd))).
    in_features = 2 * hidden_size + onehot_size
    bound = 1.0 / jnp.sqrt(jnp.float32(in_features))
    W = jax.random.uniform(k_w, (hidden_size, in_features), dtype=jnp.float32,
                           minval=-bound, maxval=bound)
    b_lin = jax.random.uniform(k_b, (hidden_size,), dtype=jnp.float32,
                               minval=-bound, maxval=bound)
    v = (1.0 / jnp.sqrt(jnp.float32(hidden_size))) * jax.random.normal(
        k_v, (hidden_size,), dtype=jnp.float32)

    # One-time parameter prep (hoisted out of the per-call hot path).
    Wh, We, b_row, v_row = prepare_attn_params(W, b_lin, v, hidden_size)

    out = attn_forward(hidden, encoder_outputs, Wh, We, b_row, v_row)
    out = jax.block_until_ready(out)

    ref = attn_reference(hidden, encoder_outputs, W, b_lin, v)
    assert out.shape == (B, 1, L)
    # Tolerance accounts for the approximate (EUP) reciprocal in the softmax.
    assert jnp.allclose(out, ref, atol=5e-3, rtol=1e-3), "mismatch vs reference"

    print("KERNEL_OK")
</pallas_src>

<mosaic_0001>
module attributes {stable_mosaic.version = 11 : i64} {
  func.func @attn_kernel(%arg0: memref<2x32xf32, #tpu.memory_space<vmem>>, %arg1: memref<32x40xf32, #tpu.memory_space<vmem>>, %arg2: memref<32x32xf32, #tpu.memory_space<vmem>>, %arg3: memref<32x40xf32, #tpu.memory_space<vmem>>, %arg4: memref<1x32xf32, #tpu.memory_space<vmem>>, %arg5: memref<1x32xf32, #tpu.memory_space<vmem>>, %arg6: memref<2x16xf32, #tpu.memory_space<vmem>>) attributes {dimension_semantics = [], scalar_prefetch = 0 : i64, scratch_operands = 0 : i64, tpu.core_type = #tpu.core_type<tc>} {
    %c0 = arith.constant 0 : index
    %c0_0 = arith.constant 0 : index
    %0 = vector.load %arg0[%c0, %c0_0] : memref<2x32xf32, #tpu.memory_space<vmem>>, vector<2x32xf32>
    %c0_1 = arith.constant 0 : index
    %c0_2 = arith.constant 0 : index
    %1 = vector.load %arg2[%c0_1, %c0_2] : memref<32x32xf32, #tpu.memory_space<vmem>>, vector<32x32xf32>
    %cst = arith.constant dense<0.000000e+00> : vector<2x32xf32>
    %2 = tpu.matmul %0, %1, %cst {dimension_numbers = #tpu.dot_dimension_numbers<[1], [1], [0], [0], [0, 0, 1, 0], [], []>} : vector<2x32xf32>, vector<32x32xf32>, vector<2x32xf32> -> vector<2x32xf32>
    %c0_3 = arith.constant 0 : index
    %c0_4 = arith.constant 0 : index
    %3 = vector.load %arg4[%c0_3, %c0_4] : memref<1x32xf32, #tpu.memory_space<vmem>>, vector<1x32xf32>
    %4 = vector.broadcast %3 : vector<1x32xf32> to vector<2x32xf32>
    %5 = arith.addf %2, %4 : vector<2x32xf32>
    %c0_5 = arith.constant 0 : index
    %c0_6 = arith.constant 0 : index
    %6 = vector.load %arg1[%c0_5, %c0_6] : memref<32x40xf32, #tpu.memory_space<vmem>>, vector<32x40xf32>
    %c0_7 = arith.constant 0 : index
    %c0_8 = arith.constant 0 : index
    %7 = vector.load %arg3[%c0_7, %c0_8] : memref<32x40xf32, #tpu.memory_space<vmem>>, vector<32x40xf32>
    %cst_9 = arith.constant dense<0.000000e+00> : vector<32x32xf32>
    %8 = tpu.matmul %6, %7, %cst_9 {dimension_numbers = #tpu.dot_dimension_numbers<[1], [1], [0], [0], [0, 0, 1, 0], [], []>} : vector<32x40xf32>, vector<32x40xf32>, vector<32x32xf32> -> vector<32x32xf32>
    %9 = vector.shape_cast %8 : vector<32x32xf32> to vector<2x16x32xf32>
    %10 = vector.shape_cast %5 : vector<2x32xf32> to vector<2x1x32xf32>
    %11 = vector.broadcast %10 : vector<2x1x32xf32> to vector<2x16x32xf32>
    %12 = arith.addf %9, %11 : vector<2x16x32xf32>
    %13 = math.tanh %12 : vector<2x16x32xf32>
    %c0_10 = arith.constant 0 : index
    %c0_11 = arith.constant 0 : index
    %14 = vector.load %arg5[%c0_10, %c0_11] : memref<1x32xf32, #tpu.memory_space<vmem>>, vector<1x32xf32>
    %15 = vector.shape_cast %14 : vector<1x32xf32> to vector<1x1x32xf32>
    %16 = vector.broadcast %15 : vector<1x1x32xf32> to vector<2x16x32xf32>
    %17 = arith.mulf %13, %16 : vector<2x16x32xf32>
    %cst_12 = arith.constant dense<0.000000e+00> : vector<2x16xf32>
    %18 = vector.multi_reduction <add>, %17, %cst_12 [2] : vector<2x16x32xf32> to vector<2x16xf32>
    %cst_13 = arith.constant dense<0xFF800000> : vector<2xf32>
    %19 = vector.multi_reduction <maximumf>, %18, %cst_13 [1] : vector<2x16xf32> to vector<2xf32>
    %20 = vector.shape_cast %19 : vector<2xf32> to vector<2x1xf32>
    %21 = vector.broadcast %20 : vector<2x1xf32> to vector<2x16xf32>
    %22 = arith.subf %18, %21 : vector<2x16xf32>
    %23 = math.exp %22 : vector<2x16xf32>
    %cst_14 = arith.constant dense<0.000000e+00> : vector<2xf32>
    %24 = vector.multi_reduction <add>, %23, %cst_14 [1] : vector<2x16xf32> to vector<2xf32>
    %25 = vector.shape_cast %24 : vector<2xf32> to vector<2x1xf32>
    %26 = tpu.reciprocal %25 {approx = true} : vector<2x1xf32> -> vector<2x1xf32>
    %27 = vector.broadcast %26 : vector<2x1xf32> to vector<2x16xf32>
    %28 = arith.mulf %23, %27 : vector<2x16xf32>
    %c0_15 = arith.constant 0 : index
    %c0_16 = arith.constant 0 : index
    %29 = vector.load %arg6[%c0_15, %c0_16] : memref<2x16xf32, #tpu.memory_space<vmem>>, vector<2x16xf32>
    tpu.vector_store %arg6[%c0_15, %c0_16], %28 {strides = array<i32>} : memref<2x16xf32, #tpu.memory_space<vmem>>, vector<2x16xf32>,
    return
  }
}

</mosaic_0001>

<bundles_post_ra>
// kernel: _attn_forward_impl.1
= control target key start
LH: loop header
LB: loop body
LE: loop exit
PB: predicated region body
PF: predicated region fallthrough
CT: control target
= control target key end

     0   :  { %vm36_vm0 = vcmask 261120   ;;  %vm130_vm1 = vcmask 326656   ;;  %v566_v2 = vmov 0.0   ;;  %vm567_vm2 = vmmov 0   ;;  %s716_s0 = inlined_call_operand.vmem [shape: f32[2,32], index: 0, kind: input, shape index: {}]   ;;  %s717_s1 = inlined_call_operand.vmem [shape: f32[32,40], index: 1, kind: input, shape index: {}]   ;;  %s718_s2 = inlined_call_operand.vmem [shape: f32[32,32], index: 2, kind: input, shape index: {}]   ;;  %s719_s3 = inlined_call_operand.vmem [shape: f32[32,40], index: 3, kind: input, shape index: {}]   ;;  %s720_s4 = inlined_call_operand.vmem [shape: f32[1,32], index: 4, kind: input, shape index: {}]   ;;  %s721_s5 = inlined_call_operand.vmem [shape: f32[1,32], index: 5, kind: input, shape index: {}]   ;;  %s722_s6 = inlined_call_operand.hbm [shape: f32[2,16], index: 6, kind: output, shape index: {}]  }
   0x1   :  { %v28_v0 = vld [vmem:[%s718_s2 + $0x18] sm:$0xff]  ;;  %494 = vmatprep.subr.mxu0 %v566_v2  ;;  %v128_v3 = vld [vmem:[%s719_s3 + $0x10] sm:$0xff]  ;;  %v122_v5 = vld [vmem:[%s717_s1] sm:$0xff]  ;;  %502 = vmatprep.mubr.msk.f32.mxu0 %vm567_vm2, %v566_v2 }
   0x2   :  { %v129_v1 = vld [vmem:[%s719_s3 + $0x18] sm:$0xff]  ;;  %495 = vmatpush3.xpose.msk.msra.mxu0 %vm36_vm0, %v28_v0  ;;  %v27_v4 = vld [vmem:[%s718_s2 + $0x10] sm:$0xff]  ;;  %v127_v6 = vld [vmem:[%s719_s3 + $0x8] sm:$0xff]  ;;  %513 = vmatprep.mubr.msk.f32.mxu1 %vm130_vm1, %v122_v5 }
   0x3   :  { %505 = vmatprep.subr.msk.mxu1 %vm130_vm1, %v129_v1  ;;  %496 = vmatprep.subr.mxu0 %v566_v2 }
   0x4   :  { %506 = vmatpush3.xpose.msk.msra.mxu1 %vm130_vm1, %v129_v1 }
   0x5   :  { %507 = vmatprep.subr.msk.mxu1 %vm130_vm1, %v128_v3 }
   0x6   :  { %11 = vsyncpa [#allocation3], 0  ;;  %497 = vmatpush3.xpose.msk.msra.mxu0 %vm36_vm0, %v27_v4  ;;  %v26_v7 = vld [vmem:[%s718_s2 + $0x8] sm:$0xff]  ;;  %v126_v8 = vld [vmem:[%s719_s3] sm:$0xff]  ;;  %v568_v14 = vmov 1966171168   ;;  %v244_v16 = vlaneseq }
   0x7   :  { %498 = vmatprep.subr.mxu0 %v566_v2  ;;  %v25_v9 = vld [vmem:[%s718_s2] sm:$0xff]  ;;  %v123_v11 = vld [vmem:[%s717_s1 + $0x8] sm:$0xff]  ;;  %v124_v12 = vld [vmem:[%s717_s1 + $0x10] sm:$0xff]  ;;  %v242_v15 = vunpack.c.l.s4 %v568_v14  ;;  %vm319_vm3 = vcmask 130112   ;;  %vm330_vm4 = vcmask 1041409   ;;  %vm333_vm5 = vcmask 123904  }
   0x8   :  { %508 = vmatpush3.xpose.msk.msra.mxu1 %vm130_vm1, %v128_v3  ;;  %v24_v10 = vld [vmem:[%s716_s0] sm:$0x3]  ;;  %v125_v13 = vld [vmem:[%s717_s1 + $0x18] sm:$0xff]  ;;  %v662_v18 = vshrl.u32 %v244_v16, 7  ;;  %v309_v52 = vand.u32 127, %v244_v16  ;;  %v569_v4 = vmov 0  }
   0x9   :  { %509 = vmatprep.subr.msk.mxu1 %vm130_vm1, %v127_v6  ;;  %v243_v17 = vunpack.c.0.s8 %v242_v15  ;;  %v466_v19 = vld [vmem:[%s720_s4] ss:$0 sm:$0xff]  ;;  %525 = vset.pattern.permute.xlu0 %v569_v4 }
   0xa   :  { %499 = vmatpush3.xpose.msk.msra.mxu0 %vm36_vm0, %v26_v7  ;;  %v669_v27 = vsub.s32 0, %v662_v18  ;;  %v480_v39 = vld [vmem:[%s721_s5] ss:$0 sm:$0xff]  ;;  %v314_v53 = vadd.s32 4294967288, %v309_v52  ;;  %v684_v57 = vsub.s32 %v309_v52, %v662_v18  ;;  %524 = vset.pattern.permute.xlu1 %v569_v4  ;;  %v344_v5 = vsub.s32 1, %v662_v18  ;;  %s570_s5 = smov [#allocation2]  }
   0xb   :  { %500 = vmatprep.subr.mxu0 %v566_v2  ;;  %v246_v20 = vsub.s32 %v243_v17, %v662_v18  ;;  %s458_s22 = sshll.u32 %s570_s5, 4  ;;  %s459_s22 = int_to_ptr.vmem [resolvable:$true] %s458_s22 }
   0xc   :  { %510 = vmatpush3.xpose.msk.msra.mxu1 %vm130_vm1, %v127_v6  ;;  %v681_v55 = vsub.s32 %v314_v53, %v662_v18  ;;  %s544_s23 = scalar_lea.vmem %s459_s22, 32  ;;  %p549_p1 = scmp.lt.s32.totalorder %s459_s22, %s459_s22 }
   0xd   :  { %511 = vmatprep.subr.msk.mxu1 %vm130_vm1, %v126_v8  ;;  %p545_p0 = scmp.ne.s32.totalorder %s459_s22, %s544_s23  ;;  %p550_p2 = scmp.lt.s32.totalorder %s544_s23, %s544_s23 }
   0xe   :  { %501 = vmatpush3.xpose.msk.msra.mxu0 %vm36_vm0, %v25_v9 }
   0xf   :  { %p551_p3 = por %p550_p2, %p549_p1 }
  0x10   :  { %512 = vmatpush3.xpose.msk.msra.mxu1 %vm130_vm1, %v126_v8 }
  0x11   :  { %503 = vmatmul.mubr.msk.f32.vlgmr.msra.gmra.mxu0 %vm36_vm0, %v24_v10  ;;  %p552_p4 = pnand %p551_p3, %p545_p0 }
  0x13   :  { %514 = vmatmul.mubr.msk.f32.vlgmr.msra.gmra.mxu1 %vm130_vm1, %v123_v11 }
  0x14   :  { %516 = vmatprep.mubr.msk.f32.mxu1 %vm130_vm1, %v124_v12 }
  0x17   :  { %517 = vmatmul.mubr.msk.f32.gmra.mxu1 %vm130_vm1, %v125_v13 }
  0xd1   :  { %v118_v21 = vpop.f32.mrf.mxu0 }
  0xd2   :  { %v119_v23 = vadd.f32 %v466_v19, %v118_v21 }
  0xd3   :  { %v515_v22 = vpop.f32.mrf.mxu1  ;;  %v504_v24 = vpop.f32.mrf.mxu0 }
  0xd4   :  { %v247_v26 = vrot.slane %v119_v23, %v246_v20 }
  0xd5   :  { %v221_v25 = vpop.f32.mrf.mxu1 }
  0xd6   :  { %v248_v28 = vcombine.high %v247_v26, %v247_v26  ;;  %v255_v29 = vrot.slane %v247_v26, %v246_v20 }
  0xd7   :  { %v518_v30 = vpop.f32.mrf.mxu1 }
  0xd8   :  { %v266_v31 = vrot.slane %v255_v29, %v669_v27  ;;  %v262_v32 = vrot.slane %v248_v28, %v246_v20 }
  0xd9   :  { %v231_v36 = vpop.f32.mrf.mxu1 }
  0xda   :  { %v274_v33 = vadd.f32 %v515_v22, %v266_v31  ;;  %v273_v34 = vadd.f32 %v266_v31, %v221_v25  ;;  %v270_v35 = vrot.slane %v262_v32, %v669_v27 }
  0xdc   :  { %526 = vtanh.f32 %v274_v33  ;;  %v276_v37 = vadd.f32 %v518_v30, %v270_v35  ;;  %v275_v38 = vadd.f32 %v270_v35, %v231_v36 }
  0xdd   :  { %528 = vtanh.f32 %v273_v34 }
  0xde   :  { %530 = vtanh.f32 %v276_v37 }
  0xdf   :  { %532 = vtanh.f32 %v275_v38 }
  0xe9   :  { %v527_v40 = vpop.eup %526 }
  0xea   :  { %v529_v41 = vpop.eup %528  ;;  %v289_v47 = vmul.f32 %v527_v40, %v480_v39 }
  0xeb   :  { %v531_v42 = vpop.eup %530  ;;  %v288_v43 = vmul.f32 %v529_v41, %v480_v39 }
  0xec   :  { %v533_v44 = vpop.eup %532  ;;  %v291_v49 = vmul.f32 %v531_v42, %v480_v39  ;;  %v295_v50 = vsel %vm36_vm0, %v289_v47, 0.0 }
  0xed   :  { %v292_v45 = vsel %vm36_vm0, %v288_v43, 0.0  ;;  %v290_v46 = vmul.f32 %v533_v44, %v480_v39 }
  0xee   :  { %293 = vadd.xlane.f32.xlu0 %v292_v45  ;;  %v301_v51 = vsel %vm36_vm0, %v291_v49, 0.0 }
  0xef   :  { %v298_v48 = vsel %vm36_vm0, %v290_v46, 0.0 }
  0xf0   :  { %299 = vadd.xlane.f32.xlu1 %v298_v48 }
  0xf2   :  { %296 = vadd.xlane.f32.xlu0 %v295_v50 }
  0xf4   :  { %302 = vadd.xlane.f32.xlu1 %v301_v51 }
 0x177   :  { %v294_v54 = vpop.xlane.xlu0 %293 }
 0x178   :  { %v313_v61 = vrot.slane %v294_v54, %v684_v57 }
 0x179   :  { %v300_v56 = vpop.xlane.xlu1 %299 }
 0x17a   :  { %v324_v62 = vrot.slane %v300_v56, %v684_v57 }
 0x17b   :  { %v297_v58 = vpop.xlane.xlu0 %296 }
 0x17c   :  { %v318_v59 = vrot.slane %v297_v58, %v681_v55 }
 0x17d   :  { %v303_v60 = vpop.xlane.xlu1 %302 }
 0x17e   :  { %v328_v63 = vrot.slane %v303_v60, %v681_v55  ;;  %v320_v0 = vsel %vm319_vm3, %v318_v59, %v313_v61 }
 0x180   :  { %v329_v1 = vsel %vm319_vm3, %v328_v63, %v324_v62 }
 0x181   :  { %v331_v2 = vsel %vm330_vm4, %v329_v1, %v320_v0 }
 0x182   :  { %v334_v3 = vsel %vm333_vm5, %v331_v2, -inf }
 0x183   :  { %335 = vmax.xlane.f32.xlu0 %v334_v3 }
 0x20c   :  { %v336_v6 = vpop.xlane.xlu0 %335 }
 0x20d   :  { %v341_v7 = vrot.slane %v336_v6, %v669_v27  ;;  %v345_v8 = vrot.slane %v336_v6, %v344_v5 }
 0x20f   :  { %v348_v9 = vsub.f32 %v294_v54, %v341_v7  ;;  %v349_v10 = vsub.f32 %v297_v58, %v341_v7  ;;  %v350_v11 = vsub.f32 %v300_v56, %v345_v8  ;;  %v351_v14 = vsub.f32 %v303_v60, %v345_v8 }
 0x211   :  { %v352_v12 = vmul.f32 1.442695, %v348_v9  ;;  %v354_v13 = vmul.f32 1.442695, %v349_v10  ;;  %v356_v15 = vmul.f32 1.442695, %v350_v11 }
 0x212   :  { %v358_v16 = vmul.f32 1.442695, %v351_v14 }
 0x213   :  { %534 = vpow2.f32 %v352_v12 }
 0x214   :  { %536 = vpow2.f32 %v354_v13 }
 0x215   :  { %538 = vpow2.f32 %v356_v15 }
 0x216   :  { %540 = vpow2.f32 %v358_v16 }
 0x220   :  { %v535_v17 = vpop.eup %534 }
 0x221   :  { %v537_v19 = vpop.eup %536  ;;  %365 = vperm.xlu1 %524, %v535_v17  }
 0x222   :  { %368 = vperm.xlu0 %525, %v537_v19   ;;  %v539_v18 = vpop.eup %538 }
 0x223   :  { %v541_v20 = vpop.eup %540 }
 0x225   :  { %371 = vperm.xlu1 %524, %v539_v18  }
 0x229   :  { %374 = vperm.xlu1 %524, %v541_v20  }
 0x29c   :  { %v366_v21 = vpop.permute.xlu1 %365 }
 0x29d   :  { %v369_v22 = vpop.permute.xlu0 %368  ;;  %v379_v25 = vrot.slane %v366_v21, %v684_v57 }
 0x29e   :  { %v383_v24 = vrot.slane %v369_v22, %v681_v55 }
 0x2a0   :  { %v372_v23 = vpop.permute.xlu1 %371  ;;  %v384_v30 = vsel %vm319_vm3, %v383_v24, %v379_v25 }
 0x2a1   :  { %v388_v28 = vrot.slane %v372_v23, %v684_v57 }
 0x2a4   :  { %v375_v26 = vpop.permute.xlu1 %374 }
 0x2a5   :  { %v392_v29 = vrot.slane %v375_v26, %v681_v55 }
 0x2a7   :  { %v393_v31 = vsel %vm319_vm3, %v392_v29, %v388_v28 }
 0x2a8   :  { %v394_v32 = vsel %vm330_vm4, %v393_v31, %v384_v30 }
 0x2a9   :  { %v396_v33 = vsel %vm333_vm5, %v394_v32, 0.0 }
 0x2aa   :  { %397 = vadd.xlane.f32.xlu1 %v396_v33 }
 0x333   :  { %v398_v34 = vpop.xlane.xlu1 %397 }
 0x334   :  { %542 = vrcp.f32 %v398_v34 }
 0x341   :  { %v543_v35 = vpop.eup %542 }
 0x342   :  { %v404_v36 = vrot.slane %v543_v35, %v669_v27  ;;  %v408_v39 = vrot.slane %v543_v35, %v344_v5 }
 0x344   :  { %v411_v37 = vmul.f32 %v535_v17, %v404_v36  ;;  %v412_v38 = vmul.f32 %v537_v19, %v404_v36  ;;  %v413_v40 = vmul.f32 %v539_v18, %v408_v39  ;;  %v414_v41 = vmul.f32 %v541_v20, %v408_v39 }
 0x346   :  { %420 = vperm.xlu0 %525, %v411_v37  }
 0x34a   :  { %423 = vperm.xlu0 %525, %v412_v38  }
 0x34e   :  { %426 = vperm.xlu0 %525, %v413_v40  }
 0x352   :  { %429 = vperm.xlu0 %525, %v414_v41  }
 0x3c1   :  { %v421_v42 = vpop.permute.xlu0 %420 }
 0x3c2   :  { %v434_v47 = vrot.slane %v421_v42, %v684_v57 }
 0x3c5   :  { %v424_v43 = vpop.permute.xlu0 %423 }
 0x3c6   :  { %v438_v45 = vrot.slane %v424_v43, %v681_v55 }
 0x3c8   :  { %v439_v49 = vsel %vm319_vm3, %v438_v45, %v434_v47 }
 0x3c9   :  { %v427_v44 = vpop.permute.xlu0 %426 }
 0x3ca   :  { %v443_v27 = vrot.slane %v427_v44, %v684_v57 }
 0x3cd   :  { %v430_v46 = vpop.permute.xlu0 %429 }
 0x3ce   :  { %v447_v48 = vrot.slane %v430_v46, %v681_v55 }
 0x3d0   :  { %v448_v50 = vsel %vm319_vm3, %v447_v48, %v443_v27 }
 0x3d1   :  { %v449_v51 = vsel %vm330_vm4, %v448_v50, %v439_v49 }
 0x3d2   :  { %451 = vst.msk [vmem:[#allocation2] sm:$0x3] %vm333_vm5, %v449_v51 }
 0x3d3   :  { %555 = shalt.err (!%p552_p4)
}
 0x3d4   :  { %461 = dma.vmem_to_hbm [thread:$0]  %s459_s22, 32, %s722_s6, [#allocation3]  }
 0x3d5   :  { %564 = dma.done.wait [#allocation3], 32  }
 0x3d6   :  { %565 = vsyncadd [#allocation3], 4294967264 }
 0x3d7   :  { %465 = vsyncpa [#allocation3], 1 }

</bundles_post_ra>
